<compile_context>
chip_gen: v6e
topology: v6e:2x2x1
jax: 0.10.0
libtpu: 0.0.40
codegen_flags: <defaults>
</compile_context>

<pallas_src>
import functools

import jax
import jax.numpy as jnp
from jax.experimental import pallas as pl
from jax.experimental.pallas import tpu as pltpu

# Finite masked-out sentinel (avoids ~3.4e38 artifacts; exactly representable range-wise
# in both float32 and bfloat16).
_BIG = 1e30


def _round_up(x, m):
    return ((x + m - 1) // m) * m


def _dimension_and_size_check(comparisons, template_labels, data_labels):
    """Python-side mirror of _tensor_dimension_and_size_check (shape-only, no compute)."""
    if comparisons.ndim != 2 or template_labels.ndim != 2 or data_labels.ndim != 2:
        raise ValueError("The dimensions of the tensors must be 2.")
    if comparisons.shape[1] != template_labels.shape[0]:
        raise ValueError("The number of templates does not match.")
    if comparisons.shape[0] != data_labels.shape[0]:
        raise ValueError("The number of samples does not match.")
    if data_labels.shape[1] != template_labels.shape[1]:
        raise ValueError("The number of classes does not match (one-hot coding).")


def _margin_loss_kernel(comp_ref, dcls_ref, tcls_ref, out_ref,
                        dplus_ref, dminus_ref, dclsb_ref, *, margin, n_chunks):
    # comp_ref  : (tm, tt)  comparisons tile, native compute dtype (f32 or bf16)
    # dcls_ref  : (tm, 1)   int32 data class ids
    # tcls_ref  : (1, tt)   int32 template class ids
    # out_ref   : (tm, 1)   f32 per-sample loss (written only in the finalize step)
    # dplus_ref / dminus_ref : (tm, 128) running element-wise mins (compute dtype)
    # dclsb_ref : (tm, 128) int32 lane-broadcast data class ids (filled once per tile)
    j = pl.program_id(1)
    cdt = dplus_ref.dtype
    big = jnp.asarray(_BIG, cdt)

    @pl.when(j == 0)
    def _init():
        dplus_ref[...] = jnp.full(dplus_ref.shape, big, cdt)
        dminus_ref[...] = jnp.full(dminus_ref.shape, big, cdt)
        # Lane-broadcast the per-row class id once per sample tile (hoisted out of
        # the per-chunk loop below).
        dclsb_ref[...] = jnp.broadcast_to(dcls_ref[...], dclsb_ref.shape)

    # Element-wise (VPU-only) fold over 128-lane chunks; no cross-lane XLU work here.
    for c in range(n_chunks):
        sl = slice(c * 128, (c + 1) * 128)
        comp_c = comp_ref[:, sl].astype(cdt)                 # (tm, 128)
        same_c = dclsb_ref[...] == tcls_ref[:, sl]           # (tm, 128) bool
        dplus_ref[...] = jnp.minimum(dplus_ref[...], jnp.where(same_c, comp_c, big))
        dminus_ref[...] = jnp.minimum(dminus_ref[...], jnp.where(same_c, big, comp_c))

    @pl.when(j == pl.num_programs(1) - 1)
    def _finalize():
        # Single cross-lane (XLU) min-reduce per sample tile, in f32.
        d_plus = jnp.min(dplus_ref[...].astype(jnp.float32), axis=-1, keepdims=True)
        d_minus = jnp.min(dminus_ref[...].astype(jnp.float32), axis=-1, keepdims=True)
        out_ref[...] = jnp.maximum(d_plus - d_minus + jnp.float32(margin), 0.0)


def margin_template_comparison_loss(
    data_template_comparisons,
    template_labels,
    data_labels,
    *,
    margin=0.3,
    dimension_and_size_check=True,
    comp_tile_bytes=4 * 1024 * 1024,   # target bytes for the comparisons block
    template_tile=2048,                # max templates per grid step (multiple of 128)
    max_sample_tile=4096,              # hard cap on rows per grid step
):
    """Forward pass of the (concrete) TemplateInputComparisonBasedLoss."""
    if dimension_and_size_check:
        _dimension_and_size_check(
            data_template_comparisons, template_labels, data_labels
        )

    n_samples, n_templates = data_template_comparisons.shape

    # Native-dtype compute path for f32/bf16; anything exotic falls back to f32.
    comp = data_template_comparisons
    if comp.dtype not in (jnp.float32, jnp.bfloat16):
        comp = comp.astype(jnp.float32)
    cdt = comp.dtype
    itemsize = comp.dtype.itemsize
    pack = 8 * (4 // itemsize)   # sublane packing: 8 rows (f32), 16 rows (bf16)

    # One-hot labels -> int32 class ids (tiny aux ops; no one-hot DMA, no mask matmul).
    # TODO(synk): argmax-derived ids assume strictly one-hot labels (as the base class does).
    data_cls = jnp.argmax(data_labels, axis=-1).astype(jnp.int32).reshape(n_samples, 1)
    tmpl_cls = jnp.argmax(template_labels, axis=-1).astype(jnp.int32).reshape(1, n_templates)

    # ---- template axis: always tiled; pad ragged T (columns padded with +BIG) ----
    template_tile = max(128, _round_up(int(template_tile), 128))
    t_al = _round_up(n_templates, 128)
    n_tsteps = max(1, -(-t_al // template_tile))          # ceil
    tt = _round_up(-(-t_al // n_tsteps), 128)             # balanced, lane-aligned tile
    t_pad = n_tsteps * tt

    # ---- sample axis: byte-targeted tile, pack-aligned, >= 2 tiles when possible ----
    n_rows = _round_up(n_samples, pack)
    tm = max(pack, (comp_tile_bytes // (tt * itemsize)) // pack * pack)
    tm = min(tm, _round_up(int(max_sample_tile), pack))
    if tm >= n_rows:
        tm = n_rows
        if n_rows >= 2 * pack:   # keep >= 2 sample tiles so both v7x cores get work
            tm = _round_up((n_rows + 1) // 2, pack)
    n_pad = _round_up(n_samples, tm)

    # ---- pad inputs ----
    pad_n = n_pad - n_samples
    pad_t = t_pad - n_templates
    if pad_n or pad_t:
        comp = jnp.pad(comp, ((0, pad_n), (0, pad_t)), constant_values=_BIG)
    if pad_n:
        data_cls = jnp.pad(data_cls, ((0, pad_n), (0, 0)), constant_values=-1)
    if pad_t:
        tmpl_cls = jnp.pad(tmpl_cls, ((0, 0), (0, pad_t)), constant_values=-2)

    # ---- right-sized VMEM limit (double-buffered blocks + scratch, with headroom) ----
    comp_block = tm * tt * itemsize
    small_blocks = tm * 4 + tt * 4 + tm * 4                 # dcls + tcls + out blocks
    scratch_bytes = 2 * tm * 128 * itemsize + tm * 128 * 4  # dplus/dminus + dclsb
    vmem_need = 2 * (comp_block + small_blocks) + scratch_bytes
    vmem_limit = int(min(max(2 * vmem_need, 8 * 1024 * 1024), 48 * 1024 * 1024))

    grid = (n_pad // tm, t_pad // tt)
    kernel = functools.partial(
        _margin_loss_kernel, margin=float(margin), n_chunks=tt // 128
    )

    out = pl.pallas_call(
        kernel,
        out_shape=jax.ShapeDtypeStruct((n_pad, 1), jnp.float32),
        grid_spec=pltpu.PrefetchScalarGridSpec(
            num_scalar_prefetch=0,
            grid=grid,
            in_specs=[
                pl.BlockSpec((tm, tt), lambda i, j: (i, j)),   # comparisons (native dtype)
                pl.BlockSpec((tm, 1), lambda i, j: (i, 0)),    # data class ids
                pl.BlockSpec((1, tt), lambda i, j: (0, j)),    # template class ids
            ],
            out_specs=pl.BlockSpec((tm, 1), lambda i, j: (i, 0)),
            scratch_shapes=[
                pltpu.VMEM((tm, 128), cdt),         # running d_plus (lane-wide)
                pltpu.VMEM((tm, 128), cdt),         # running d_minus (lane-wide)
                pltpu.VMEM((tm, 128), jnp.int32),   # lane-broadcast data class ids
            ],
        ),
        compiler_params=pltpu.CompilerParams(
            dimension_semantics=("parallel", "arbitrary"),
            vmem_limit_bytes=vmem_limit,
        ),
    )(comp, data_cls, tmpl_cls)

    return out[:n_samples, 0]  # (num_samples,)


def _reference_loss(comparisons, template_labels, data_labels, margin=0.3):
    """Pure-JAX reference for correctness checking."""
    comparisons = comparisons.astype(jnp.float32)
    mask = (data_labels.astype(jnp.float32) @ template_labels.astype(jnp.float32).T) > 0.5
    big = jnp.float32(_BIG)
    d_plus = jnp.min(jnp.where(mask, comparisons, big), axis=-1)
    d_minus = jnp.min(jnp.where(mask, big, comparisons), axis=-1)
    return jnp.maximum(d_plus - d_minus + margin, 0.0)


if __name__ == "__main__":
    key = jax.random.PRNGKey(0)

    # --- Test 1: small canonical shapes, f32, single-tile grid ---
    k_comp, k_dlbl = jax.random.split(key, 2)
    num_samples, num_templates, num_classes = 8, 16, 4
    comparisons = jax.random.uniform(
        k_comp, (num_samples, num_templates), dtype=jnp.float32, minval=0.0, maxval=2.0
    )
    template_labels = jax.nn.one_hot(
        jnp.arange(num_templates) % num_classes, num_classes, dtype=jnp.float32
    )
    data_labels = jax.nn.one_hot(
        jax.random.randint(k_dlbl, (num_samples,), 0, num_classes),
        num_classes, dtype=jnp.float32,
    )
    loss = margin_template_comparison_loss(
        comparisons, template_labels, data_labels, margin=0.3
    )
    loss = jax.block_until_ready(loss)
    ref = _reference_loss(comparisons, template_labels, data_labels, margin=0.3)
    assert loss.shape == (num_samples,)
    assert jnp.allclose(loss, ref, atol=1e-5), (loss, ref)

    # --- Test 2: ragged N and ragged T (row + BIG-column padding paths), bf16
    #             comparisons (native-dtype compute), multi-step template grid ---
    k_comp2, k_dlbl2 = jax.random.split(jax.random.PRNGKey(1), 2)
    n2, t2, c2 = 13, 200, 10
    comparisons2 = jax.random.uniform(
        k_comp2, (n2, t2), dtype=jnp.float32, minval=0.0, maxval=2.0
    ).astype(jnp.bfloat16)
    template_labels2 = jax.nn.one_hot(jnp.arange(t2) % c2, c2, dtype=jnp.float32)
    data_labels2 = jax.nn.one_hot(
        jax.random.randint(k_dlbl2, (n2,), 0, c2), c2, dtype=jnp.float32
    )
    loss2 = margin_template_comparison_loss(
        comparisons2, template_labels2, data_labels2,
        margin=0.3, template_tile=128,
    )
    loss2 = jax.block_until_ready(loss2)
    ref2 = _reference_loss(comparisons2, template_labels2, data_labels2, margin=0.3)
    assert loss2.shape == (n2,)
    assert jnp.allclose(loss2, ref2, atol=1e-5), (loss2, ref2)

    # --- Test 3: moderate shapes, f32, default tiling (exercises the >=2 sample-tile
    #             megacore split and the multi-chunk deferred reduction) ---
    k_comp3, k_dlbl3 = jax.random.split(jax.random.PRNGKey(2), 2)
    n3, t3, c3 = 300, 1024, 10
    comparisons3 = jax.random.uniform(
        k_comp3, (n3, t3), dtype=jnp.float32, minval=0.0, maxval=2.0
    )
    template_labels3 = jax.nn.one_hot(jnp.arange(t3) % c3, c3, dtype=jnp.float32)
    data_labels3 = jax.nn.one_hot(
        jax.random.randint(k_dlbl3, (n3,), 0, c3), c3, dtype=jnp.float32
    )
    loss3 = margin_template_comparison_loss(
        comparisons3, template_labels3, data_labels3, margin=0.3
    )
    loss3 = jax.block_until_ready(loss3)
    ref3 = _reference_loss(comparisons3, template_labels3, data_labels3, margin=0.3)
    assert loss3.shape == (n3,)
    assert jnp.allclose(loss3, ref3, atol=1e-5), (loss3, ref3)

    print("KERNEL_OK")
</pallas_src>

<mosaic_0001>
module attributes {stable_mosaic.version = 11 : i64} {
  func.func @_margin_loss_kernel(%arg0: i32, %arg1: i32, %arg2: memref<8x128xf32, #tpu.memory_space<vmem>>, %arg3: memref<8x1xi32, #tpu.memory_space<vmem>>, %arg4: memref<1x128xi32, #tpu.memory_space<vmem>>, %arg5: memref<8x1xf32, #tpu.memory_space<vmem>>, %arg6: memref<8x128xf32, #tpu.memory_space<vmem>>, %arg7: memref<8x128xf32, #tpu.memory_space<vmem>>, %arg8: memref<8x128xi32, #tpu.memory_space<vmem>>) attributes {dimension_semantics = [#tpu.dimension_semantics<parallel>, #tpu.dimension_semantics<arbitrary>], iteration_bounds = array<i64: 1, 1>, scalar_prefetch = 0 : i64, scratch_operands = 3 : i64, tpu.core_type = #tpu.core_type<tc>, window_params = [{transform_indices = @transform_0, window_bounds = array<i64: 8, 128>}, {transform_indices = @transform_1, window_bounds = array<i64: 8, 1>}, {transform_indices = @transform_2, window_bounds = array<i64: 1, 128>}, {transform_indices = @transform_3, window_bounds = array<i64: 8, 1>}]} {
    %c0_i32 = arith.constant 0 : i32
    %0 = arith.cmpi eq, %arg1, %c0_i32 : i32
    %1 = arith.extui %0 : i1 to i32
    %cst = arith.constant 1.000000e+30 : f32
    %c0_i32_0 = arith.constant 0 : i32
    %2 = arith.cmpi ne, %1, %c0_i32_0 : i32
    scf.if %2 {
      %21 = vector.broadcast %cst : f32 to vector<8x128xf32>
      %c0_18 = arith.constant 0 : index
      %c0_19 = arith.constant 0 : index
      %22 = vector.load %arg6[%c0_18, %c0_19] : memref<8x128xf32, #tpu.memory_space<vmem>>, vector<8x128xf32>
      tpu.vector_store %arg6[%c0_18, %c0_19], %21 {strides = array<i32>} : memref<8x128xf32, #tpu.memory_space<vmem>>, vector<8x128xf32>,
      %23 = vector.broadcast %cst : f32 to vector<8x128xf32>
      %c0_20 = arith.constant 0 : index
      %c0_21 = arith.constant 0 : index
      %24 = vector.load %arg7[%c0_20, %c0_21] : memref<8x128xf32, #tpu.memory_space<vmem>>, vector<8x128xf32>
      tpu.vector_store %arg7[%c0_20, %c0_21], %23 {strides = array<i32>} : memref<8x128xf32, #tpu.memory_space<vmem>>, vector<8x128xf32>,
      %c0_22 = arith.constant 0 : index
      %c0_23 = arith.constant 0 : index
      %25 = vector.load %arg3[%c0_22, %c0_23] : memref<8x1xi32, #tpu.memory_space<vmem>>, vector<8x1xi32>
      %26 = vector.shape_cast %25 : vector<8x1xi32> to vector<8x1xi32>
      %27 = vector.broadcast %26 : vector<8x1xi32> to vector<8x128xi32>
      %c0_24 = arith.constant 0 : index
      %c0_25 = arith.constant 0 : index
      %28 = vector.load %arg8[%c0_24, %c0_25] : memref<8x128xi32, #tpu.memory_space<vmem>>, vector<8x128xi32>
      tpu.vector_store %arg8[%c0_24, %c0_25], %27 {strides = array<i32>} : memref<8x128xi32, #tpu.memory_space<vmem>>, vector<8x128xi32>,
    } else {
    }
    %c0 = arith.constant 0 : index
    %c0_1 = arith.constant 0 : index
    %3 = vector.load %arg2[%c0, %c0_1] : memref<8x128xf32, #tpu.memory_space<vmem>>, vector<8x128xf32>
    %c0_2 = arith.constant 0 : index
    %c0_3 = arith.constant 0 : index
    %4 = vector.load %arg8[%c0_2, %c0_3] : memref<8x128xi32, #tpu.memory_space<vmem>>, vector<8x128xi32>
    %c0_4 = arith.constant 0 : index
    %c0_5 = arith.constant 0 : index
    %5 = vector.load %arg4[%c0_4, %c0_5] : memref<1x128xi32, #tpu.memory_space<vmem>>, vector<1x128xi32>
    %6 = vector.broadcast %5 : vector<1x128xi32> to vector<8x128xi32>
    %7 = arith.cmpi eq, %4, %6 : vector<8x128xi32>
    %c0_6 = arith.constant 0 : index
    %c0_7 = arith.constant 0 : index
    %8 = vector.load %arg6[%c0_6, %c0_7] : memref<8x128xf32, #tpu.memory_space<vmem>>, vector<8x128xf32>
    %cst_8 = arith.constant 1.000000e+30 : f32
    %9 = vector.broadcast %cst_8 : f32 to vector<8x128xf32>
    %10 = arith.select %7, %3, %9 : vector<8x128xi1>, vector<8x128xf32>
    %11 = arith.minimumf %8, %10 : vector<8x128xf32>
    %c0_9 = arith.constant 0 : index
    %c0_10 = arith.constant 0 : index
    %12 = vector.load %arg6[%c0_9, %c0_10] : memref<8x128xf32, #tpu.memory_space<vmem>>, vector<8x128xf32>
    tpu.vector_store %arg6[%c0_9, %c0_10], %11 {strides = array<i32>} : memref<8x128xf32, #tpu.memory_space<vmem>>, vector<8x128xf32>,
    %c0_11 = arith.constant 0 : index
    %c0_12 = arith.constant 0 : index
    %13 = vector.load %arg7[%c0_11, %c0_12] : memref<8x128xf32, #tpu.memory_space<vmem>>, vector<8x128xf32>
    %cst_13 = arith.constant 1.000000e+30 : f32
    %14 = vector.broadcast %cst_13 : f32 to vector<8x128xf32>
    %15 = arith.select %7, %14, %3 : vector<8x128xi1>, vector<8x128xf32>
    %16 = arith.minimumf %13, %15 : vector<8x128xf32>
    %c0_14 = arith.constant 0 : index
    %c0_15 = arith.constant 0 : index
    %17 = vector.load %arg7[%c0_14, %c0_15] : memref<8x128xf32, #tpu.memory_space<vmem>>, vector<8x128xf32>
    tpu.vector_store %arg7[%c0_14, %c0_15], %16 {strides = array<i32>} : memref<8x128xf32, #tpu.memory_space<vmem>>, vector<8x128xf32>,
    %c0_i32_16 = arith.constant 0 : i32
    %18 = arith.cmpi eq, %arg1, %c0_i32_16 : i32
    %19 = arith.extui %18 : i1 to i32
    %c0_i32_17 = arith.constant 0 : i32
    %20 = arith.cmpi ne, %19, %c0_i32_17 : i32
    scf.if %20 {
      %c0_18 = arith.constant 0 : index
      %c0_19 = arith.constant 0 : index
      %21 = vector.load %arg6[%c0_18, %c0_19] : memref<8x128xf32, #tpu.memory_space<vmem>>, vector<8x128xf32>
      %cst_20 = arith.constant dense<0x7F800000> : vector<8xf32>
      %22 = vector.multi_reduction <minimumf>, %21, %cst_20 [1] : vector<8x128xf32> to vector<8xf32>
      %23 = vector.shape_cast %22 : vector<8xf32> to vector<8x1xf32>
      %c0_21 = arith.constant 0 : index
      %c0_22 = arith.constant 0 : index
      %24 = vector.load %arg7[%c0_21, %c0_22] : memref<8x128xf32, #tpu.memory_space<vmem>>, vector<8x128xf32>
      %cst_23 = arith.constant dense<0x7F800000> : vector<8xf32>
      %25 = vector.multi_reduction <minimumf>, %24, %cst_23 [1] : vector<8x128xf32> to vector<8xf32>
      %26 = vector.shape_cast %25 : vector<8xf32> to vector<8x1xf32>
      %27 = arith.subf %23, %26 : vector<8x1xf32>
      %cst_24 = arith.constant 3.000000e-01 : f32
      %28 = vector.broadcast %cst_24 : f32 to vector<8x1xf32>
      %29 = arith.addf %27, %28 : vector<8x1xf32>
      %cst_25 = arith.constant 0.000000e+00 : f32
      %30 = vector.broadcast %cst_25 : f32 to vector<8x1xf32>
      %31 = arith.maximumf %29, %30 : vector<8x1xf32>
      %c0_26 = arith.constant 0 : index
      %c0_27 = arith.constant 0 : index
      %32 = vector.load %arg5[%c0_26, %c0_27] : memref<8x1xf32, #tpu.memory_space<vmem>>, vector<8x1xf32>
      tpu.vector_store %arg5[%c0_26, %c0_27], %31 {strides = array<i32>} : memref<8x1xf32, #tpu.memory_space<vmem>>, vector<8x1xf32>,
    } else {
    }
    return
  }
  func.func @transform_0(%arg0: i32, %arg1: i32) -> (i32, i32) {
    %c0_i32 = arith.constant 0 : i32
    return %arg0, %arg1 : i32, i32
  }
  func.func @transform_1(%arg0: i32, %arg1: i32) -> (i32, i32) {
    %c0_i32 = arith.constant 0 : i32
    %c0_i32_0 = arith.constant 0 : i32
    return %arg0, %c0_i32 : i32, i32
  }
  func.func @transform_2(%arg0: i32, %arg1: i32) -> (i32, i32) {
    %c0_i32 = arith.constant 0 : i32
    %c0_i32_0 = arith.constant 0 : i32
    return %c0_i32, %arg1 : i32, i32
  }
  func.func @transform_3(%arg0: i32, %arg1: i32) -> (i32, i32) {
    %c0_i32 = arith.constant 0 : i32
    %c0_i32_0 = arith.constant 0 : i32
    return %arg0, %c0_i32 : i32, i32
  }
}

</mosaic_0001>

<bundles_post_ra>
// kernel: tpu_custom_call.1
= control target key start
LH: loop header
LB: loop body
LE: loop exit
PB: predicated region body
PF: predicated region fallthrough
CT: control target
= control target key end

     0   :  { %v62_v0 = vmov 0   ;;  %vm53_vm1 = vcmask 7168   ;;  %s95_s1 = inlined_call_operand.vmem [shape: s32[8,1], index: 1, kind: input, shape index: {}]   ;;  %s96_s2 = inlined_call_operand.vmem [shape: s32[1,128], index: 2, kind: input, shape index: {}]   ;;  %s97_s0 = inlined_call_operand.vmem [shape: f32[8,128], index: 0, kind: input, shape index: {}]   ;;  %s98_s3 = inlined_call_operand.vmem [shape: f32[8,1], index: 3, kind: output, shape index: {}]  }
   0x1   :  { %61 = vset.pattern.permute.xlu0 %v62_v0  ;;  %v20_v1 = vld [vmem:[%s95_s1] sm:$0xff] }
   0x2   :  { %22 = vperm.xlu0 %61, %v20_v1   ;;  %v59_v2 = vld [vmem:[%s96_s2] ss:$0 sm:$0xff] }
   0x3   :  { %v25_v3 = vld [vmem:[%s97_s0] sm:$0xff] }
  0x7d   :  { %v23_v4 = vpop.permute.xlu0 %22 }
  0x7e   :  { %vm32_vm0 = vcmp.eq.s32.totalorder %v23_v4, %v59_v2 }
  0x7f   :  { %v38_v5 = vsel %vm32_vm0, 1e+30, %v25_v3  ;;  %v34_v6 = vsel %vm32_vm0, %v25_v3, 1e+30 }
  0x80   :  { %v39_v7 = vmin.f32 %v38_v5, 1e+30  ;;  %v35_v8 = vmin.f32 %v34_v6, 1e+30 }
  0x82   :  { %48 = vmin.xlane.f32.xlu1 %v39_v7  ;;  %45 = vmin.xlane.f32.xlu0 %v35_v8 }
 0x10b   :  { %v49_v9 = vpop.xlane.xlu1 %48  ;;  %v46_v10 = vpop.xlane.xlu0 %45 }
 0x10c   :  { %v50_v11 = vsub.f32 %v46_v10, %v49_v9 }
 0x10e   :  { %v51_v12 = vadd.f32 0.3, %v50_v11 }
 0x110   :  { %v52_v13 = vmax.f32 %v51_v12, 0.0 }
 0x112   :  { %54 = vst.msk [vmem:[%s98_s3] sm:$0xff] %vm53_vm1, %v52_v13 }

</bundles_post_ra>
